<compile_context>
chip_gen: v7x
topology: tpu7x:2x2x1
jax: 0.10.0
libtpu: 0.0.40
codegen_flags: <defaults>
</compile_context>

<pallas_src>
import functools

import jax
import jax.numpy as jnp
from jax.experimental import pallas as pl
from jax.experimental.pallas import tpu as pltpu


def _double_conv_kernel(x_ref, w1_ref, b1_ref, w2_ref, b2_ref, o_ref,
                        xpad_ref, hpad_ref, *, H, W, pad):
    """One batch image per grid step.

    x_ref : (1, C_in, H*W)        flattened NCHW input tile
    w1_ref: (C_mid, 9*C_in)       conv1 weights (BN1 scale folded), taps ordered (kh, kw, ci)
    b1_ref: (C_mid, 1)            folded BN1 bias
    w2_ref: (C_out, 9*C_mid)      conv2 weights (BN2 scale folded)
    b2_ref: (C_out, 1)            folded BN2 bias
    o_ref : (1, C_out, H*W)       output tile
    xpad_ref: VMEM (C_in,  H*W + 2*pad) scratch (zero lane-padded image)
    hpad_ref: VMEM (C_mid, H*W + 2*pad) scratch (zero lane-padded hidden act)
    """
    HW = H * W

    # Column masks for the +/-1 taps in the w direction (shared by both convs).
    # Hoisted: computed once per kernel invocation.
    col = jax.lax.broadcasted_iota(jnp.int32, (1, HW), 1) % W
    not_first_col = (col > 0).astype(jnp.float32)      # tap reads w-1 -> invalid at w == 0
    not_last_col = (col < W - 1).astype(jnp.float32)   # tap reads w+1 -> invalid at w == W-1

    def im2col(src_ref):
        # src_ref: (C, HW + 2*pad); image lives in [pad, pad+HW), zeros elsewhere.
        # The zero pad supplies the h = -1 / h = H boundary rows for free.
        rows = []
        for kh in range(3):
            for kw in range(3):
                s = (kh - 1) * W + (kw - 1)
                tap = src_ref[:, pad + s: pad + s + HW]          # (C, HW) = x[:, p + s]
                if kw == 0:
                    tap = tap * not_first_col
                elif kw == 2:
                    tap = tap * not_last_col
                rows.append(tap)
        # Row order (kh, kw, ci) matches the weight reshape done in the wrapper.
        return jnp.concatenate(rows, axis=0)                     # (9*C, HW)

    # ---- Layer 1: conv3x3 (+ folded BN scale) + bias + ReLU ----
    xpad_ref[...] = jnp.zeros_like(xpad_ref)
    xpad_ref[:, pad: pad + HW] = x_ref[0]
    p1 = im2col(xpad_ref)
    h1 = jnp.dot(w1_ref[...], p1, preferred_element_type=jnp.float32)
    h1 = jnp.maximum(h1 + b1_ref[...], 0.0)

    # ---- Layer 2: conv3x3 (+ folded BN scale) + bias + ReLU ----
    hpad_ref[...] = jnp.zeros_like(hpad_ref)
    hpad_ref[:, pad: pad + HW] = h1
    p2 = im2col(hpad_ref)
    h2 = jnp.dot(w2_ref[...], p2, preferred_element_type=jnp.float32)
    h2 = jnp.maximum(h2 + b2_ref[...], 0.0)

    o_ref[0] = h2.astype(o_ref.dtype)


def double_conv_forward(x, w1, gamma1, beta1, mean1, var1,
                        w2, gamma2, beta2, mean2, var2, eps=1e-5):
    """DoubleConv forward (inference-mode BN).

    x : (N, C_in, H, W) f32
    w1: (C_mid, C_in, 3, 3)   w2: (C_out, C_mid, 3, 3)
    gamma/beta/mean/var: per-channel BN parameters & running stats.
    Returns (N, C_out, H, W).
    """
    N, C_in, H, W = x.shape
    C_mid = w1.shape[0]
    C_out = w2.shape[0]
    HW = H * W
    # Lane padding for the shifted 3x3 taps; needs to be >= W+1 (rounded to 128
    # so the interior store stays lane-aligned).
    pad = ((W + 1 + 127) // 128) * 128

    # Fold BN (eval mode) into a per-channel affine: y = conv(x) * s + b.
    s1 = gamma1 * jax.lax.rsqrt(var1 + eps)
    b1 = beta1 - mean1 * s1
    s2 = gamma2 * jax.lax.rsqrt(var2 + eps)
    b2 = beta2 - mean2 * s2

    # Fold the scale into the (tiny) conv weights and reorder taps to
    # (co, kh, kw, ci) so the contraction matches the patch-row ordering
    # built inside the kernel.  These are parameter-sized tensors; negligible.
    w1_mat = jnp.transpose(w1 * s1[:, None, None, None], (0, 2, 3, 1)).reshape(C_mid, 9 * C_in)
    w2_mat = jnp.transpose(w2 * s2[:, None, None, None], (0, 2, 3, 1)).reshape(C_out, 9 * C_mid)
    b1_mat = b1.reshape(C_mid, 1).astype(jnp.float32)
    b2_mat = b2.reshape(C_out, 1).astype(jnp.float32)

    # Free reshape (NCHW is contiguous): channels on sublanes, H*W on lanes.
    x_flat = x.reshape(N, C_in, HW)

    kernel = functools.partial(_double_conv_kernel, H=H, W=W, pad=pad)

    y_flat = pl.pallas_call(
        kernel,
        out_shape=jax.ShapeDtypeStruct((N, C_out, HW), x.dtype),
        grid_spec=pltpu.PrefetchScalarGridSpec(
            num_scalar_prefetch=0,
            grid=(N,),
            in_specs=[
                pl.BlockSpec((1, C_in, HW), lambda n: (n, 0, 0)),      # image tile
                pl.BlockSpec((C_mid, 9 * C_in), lambda n: (0, 0)),     # conv1 weights
                pl.BlockSpec((C_mid, 1), lambda n: (0, 0)),            # conv1 folded bias
                pl.BlockSpec((C_out, 9 * C_mid), lambda n: (0, 0)),    # conv2 weights
                pl.BlockSpec((C_out, 1), lambda n: (0, 0)),            # conv2 folded bias
            ],
            out_specs=pl.BlockSpec((1, C_out, HW), lambda n: (n, 0, 0)),
            scratch_shapes=[
                pltpu.VMEM((C_in, HW + 2 * pad), jnp.float32),
                pltpu.VMEM((C_mid, HW + 2 * pad), jnp.float32),
            ],
        ),
        compiler_params=pltpu.CompilerParams(
            dimension_semantics=("parallel",),   # batch steps shard across v7x's 2 TCs
        ),
    )(x_flat, w1_mat, b1_mat, w2_mat, b2_mat)

    return y_flat.reshape(N, C_out, H, W)


if __name__ == "__main__":
    key = jax.random.PRNGKey(0)
    keys = jax.random.split(key, 12)

    # Small shapes consistent with the module: DoubleConv(4, 8) -> mid = out = 8.
    N, C_in, C_out, H, W = 2, 4, 8, 16, 16
    C_mid = C_out

    x = jax.random.normal(keys[0], (N, C_in, H, W), dtype=jnp.float32)

    def conv_init(k, co, ci):
        bound = 1.0 / ((ci * 9) ** 0.5)
        return jax.random.uniform(k, (co, ci, 3, 3), minval=-bound, maxval=bound,
                                  dtype=jnp.float32)

    w1 = conv_init(keys[1], C_mid, C_in)
    w2 = conv_init(keys[2], C_out, C_mid)

    gamma1 = jax.random.uniform(keys[3], (C_mid,), minval=0.5, maxval=1.5, dtype=jnp.float32)
    beta1 = 0.1 * jax.random.normal(keys[4], (C_mid,), dtype=jnp.float32)
    mean1 = 0.1 * jax.random.normal(keys[5], (C_mid,), dtype=jnp.float32)
    var1 = jax.random.uniform(keys[6], (C_mid,), minval=0.5, maxval=1.5, dtype=jnp.float32)

    gamma2 = jax.random.uniform(keys[7], (C_out,), minval=0.5, maxval=1.5, dtype=jnp.float32)
    beta2 = 0.1 * jax.random.normal(keys[8], (C_out,), dtype=jnp.float32)
    mean2 = 0.1 * jax.random.normal(keys[9], (C_out,), dtype=jnp.float32)
    var2 = jax.random.uniform(keys[10], (C_out,), minval=0.5, maxval=1.5, dtype=jnp.float32)

    y = double_conv_forward(x, w1, gamma1, beta1, mean1, var1,
                            w2, gamma2, beta2, mean2, var2)
    y = jax.block_until_ready(y)

    # Plain-XLA reference: conv3x3(pad=1, no bias) -> BN(eval) -> ReLU, twice.
    def conv(x_, w_):
        return jax.lax.conv_general_dilated(
            x_, w_, window_strides=(1, 1), padding=((1, 1), (1, 1)),
            dimension_numbers=("NCHW", "OIHW", "NCHW"))

    def bn(x_, g, b, m, v, eps=1e-5):
        inv = jax.lax.rsqrt(v + eps)
        return (x_ - m[None, :, None, None]) * (g * inv)[None, :, None, None] \
            + b[None, :, None, None]

    h_ref = jax.nn.relu(bn(conv(x, w1), gamma1, beta1, mean1, var1))
    y_ref = jax.nn.relu(bn(conv(h_ref, w2), gamma2, beta2, mean2, var2))

    assert y.shape == (N, C_out, H, W)
    # Tolerance covers possible MXU f32-pass differences vs the XLA conv path.
    assert jnp.allclose(y, y_ref, atol=1e-2, rtol=1e-2), \
        float(jnp.max(jnp.abs(y - y_ref)))

    print("KERNEL_OK")
</pallas_src>

<mosaic_0001>
module attributes {stable_mosaic.version = 11 : i64} {
  func.func @_double_conv_kernel(%arg0: i32, %arg1: memref<1x4x256xf32, #tpu.memory_space<vmem>>, %arg2: memref<8x36xf32, #tpu.memory_space<vmem>>, %arg3: memref<8x1xf32, #tpu.memory_space<vmem>>, %arg4: memref<8x72xf32, #tpu.memory_space<vmem>>, %arg5: memref<8x1xf32, #tpu.memory_space<vmem>>, %arg6: memref<1x8x256xf32, #tpu.memory_space<vmem>>, %arg7: memref<4x512xf32, #tpu.memory_space<vmem>>, %arg8: memref<8x512xf32, #tpu.memory_space<vmem>>) attributes {dimension_semantics = [#tpu.dimension_semantics<parallel>], iteration_bounds = array<i64: 2>, scalar_prefetch = 0 : i64, scratch_operands = 2 : i64, tpu.core_type = #tpu.core_type<tc>, window_params = [{transform_indices = @transform_0, window_bounds = array<i64: 1, 4, 256>}, {pipeline_mode = #tpu.pipeline_mode<synchronous>, transform_indices = @transform_1, window_bounds = array<i64: 8, 36>}, {pipeline_mode = #tpu.pipeline_mode<synchronous>, transform_indices = @transform_2, window_bounds = array<i64: 8, 1>}, {pipeline_mode = #tpu.pipeline_mode<synchronous>, transform_indices = @transform_3, window_bounds = array<i64: 8, 72>}, {pipeline_mode = #tpu.pipeline_mode<synchronous>, transform_indices = @transform_4, window_bounds = array<i64: 8, 1>}, {transform_indices = @transform_5, window_bounds = array<i64: 1, 8, 256>}]} {
    %0 = tpu.iota {dimensions = array<i32: 1>} : vector<1x256xi32>
    %c16_i32 = arith.constant 16 : i32
    %c0_i32 = arith.constant 0 : i32
    %1 = arith.cmpi eq, %c16_i32, %c0_i32 : i32
    %c1_i32 = arith.constant 1 : i32
    %2 = arith.select %1, %c1_i32, %c16_i32 : i32
    %3 = vector.broadcast %2 : i32 to vector<1x256xi32>
    %4 = arith.remsi %0, %3 : vector<1x256xi32>
    %c0_i32_0 = arith.constant 0 : i32
    %5 = vector.broadcast %c0_i32_0 : i32 to vector<1x256xi32>
    %6 = arith.cmpi ne, %4, %5 : vector<1x256xi32>
    %c0_i32_1 = arith.constant 0 : i32
    %7 = vector.broadcast %c0_i32_1 : i32 to vector<1x256xi32>
    %8 = arith.cmpi slt, %4, %7 : vector<1x256xi32>
    %c0_i32_2 = arith.constant 0 : i32
    %9 = arith.cmpi slt, %2, %c0_i32_2 : i32
    %10 = vector.broadcast %9 : i1 to vector<1x256xi1>
    %11 = vector.broadcast %10 : vector<1x256xi1> to vector<1x256xi1>
    %12 = arith.xori %8, %11 : vector<1x256xi1>
    %13 = arith.andi %12, %6 : vector<1x256xi1>
    %14 = vector.broadcast %2 : i32 to vector<1x256xi32>
    %15 = arith.addi %4, %14 : vector<1x256xi32>
    %16 = arith.select %13, %15, %4 : vector<1x256xi1>, vector<1x256xi32>
    %c0_i32_3 = arith.constant 0 : i32
    %17 = vector.broadcast %c0_i32_3 : i32 to vector<1x256xi32>
    %18 = arith.cmpi sgt, %16, %17 : vector<1x256xi32>
    %19 = arith.extui %18 : vector<1x256xi1> to vector<1x256xi32>
    %20 = arith.sitofp %19 : vector<1x256xi32> to vector<1x256xf32>
    %c15_i32 = arith.constant 15 : i32
    %21 = vector.broadcast %c15_i32 : i32 to vector<1x256xi32>
    %22 = arith.cmpi slt, %16, %21 : vector<1x256xi32>
    %23 = arith.extui %22 : vector<1x256xi1> to vector<1x256xi32>
    %24 = arith.sitofp %23 : vector<1x256xi32> to vector<1x256xf32>
    %cst = arith.constant 0.000000e+00 : f32
    %25 = vector.broadcast %cst : f32 to vector<4x512xf32>
    %c0 = arith.constant 0 : index
    %c0_4 = arith.constant 0 : index
    %26 = vector.load %arg7[%c0, %c0_4] : memref<4x512xf32, #tpu.memory_space<vmem>>, vector<4x512xf32>
    tpu.vector_store %arg7[%c0, %c0_4], %25 {strides = array<i32>} : memref<4x512xf32, #tpu.memory_space<vmem>>, vector<4x512xf32>,
    %c0_5 = arith.constant 0 : index
    %c0_6 = arith.constant 0 : index
    %c0_7 = arith.constant 0 : index
    %27 = vector.load %arg1[%c0_5, %c0_6, %c0_7] : memref<1x4x256xf32, #tpu.memory_space<vmem>>, vector<1x4x256xf32>
    %28 = vector.shape_cast %27 : vector<1x4x256xf32> to vector<4x256xf32>
    %c0_8 = arith.constant 0 : index
    %c128 = arith.constant 128 : index
    %29 = vector.load %arg7[%c0_8, %c128] : memref<4x512xf32, #tpu.memory_space<vmem>>, vector<4x256xf32>
    tpu.vector_store %arg7[%c0_8, %c128], %28 {strides = array<i32>} : memref<4x512xf32, #tpu.memory_space<vmem>>, vector<4x256xf32>,
    %c0_9 = arith.constant 0 : index
    %c111 = arith.constant 111 : index
    %30 = vector.load %arg7[%c0_9, %c111] : memref<4x512xf32, #tpu.memory_space<vmem>>, vector<4x256xf32>
    %31 = vector.broadcast %20 : vector<1x256xf32> to vector<4x256xf32>
    %32 = arith.mulf %30, %31 : vector<4x256xf32>
    %c0_10 = arith.constant 0 : index
    %c112 = arith.constant 112 : index
    %33 = vector.load %arg7[%c0_10, %c112] : memref<4x512xf32, #tpu.memory_space<vmem>>, vector<4x256xf32>
    %c0_11 = arith.constant 0 : index
    %c113 = arith.constant 113 : index
    %34 = vector.load %arg7[%c0_11, %c113] : memref<4x512xf32, #tpu.memory_space<vmem>>, vector<4x256xf32>
    %35 = vector.broadcast %24 : vector<1x256xf32> to vector<4x256xf32>
    %36 = arith.mulf %34, %35 : vector<4x256xf32>
    %c0_12 = arith.constant 0 : index
    %c127 = arith.constant 127 : index
    %37 = vector.load %arg7[%c0_12, %c127] : memref<4x512xf32, #tpu.memory_space<vmem>>, vector<4x256xf32>
    %38 = vector.broadcast %20 : vector<1x256xf32> to vector<4x256xf32>
    %39 = arith.mulf %37, %38 : vector<4x256xf32>
    %c0_13 = arith.constant 0 : index
    %c128_14 = arith.constant 128 : index
    %40 = vector.load %arg7[%c0_13, %c128_14] : memref<4x512xf32, #tpu.memory_space<vmem>>, vector<4x256xf32>
    %c0_15 = arith.constant 0 : index
    %c129 = arith.constant 129 : index
    %41 = vector.load %arg7[%c0_15, %c129] : memref<4x512xf32, #tpu.memory_space<vmem>>, vector<4x256xf32>
    %42 = vector.broadcast %24 : vector<1x256xf32> to vector<4x256xf32>
    %43 = arith.mulf %41, %42 : vector<4x256xf32>
    %c0_16 = arith.constant 0 : index
    %c143 = arith.constant 143 : index
    %44 = vector.load %arg7[%c0_16, %c143] : memref<4x512xf32, #tpu.memory_space<vmem>>, vector<4x256xf32>
    %45 = vector.broadcast %20 : vector<1x256xf32> to vector<4x256xf32>
    %46 = arith.mulf %44, %45 : vector<4x256xf32>
    %c0_17 = arith.constant 0 : index
    %c144 = arith.constant 144 : index
    %47 = vector.load %arg7[%c0_17, %c144] : memref<4x512xf32, #tpu.memory_space<vmem>>, vector<4x256xf32>
    %c0_18 = arith.constant 0 : index
    %c145 = arith.constant 145 : index
    %48 = vector.load %arg7[%c0_18, %c145] : memref<4x512xf32, #tpu.memory_space<vmem>>, vector<4x256xf32>
    %49 = vector.broadcast %24 : vector<1x256xf32> to vector<4x256xf32>
    %50 = arith.mulf %48, %49 : vector<4x256xf32>
    %51 = tpu.concatenate %32, %33, %36, %39, %40, %43, %46, %47, %50 in 0 : vector<4x256xf32>, vector<4x256xf32>, vector<4x256xf32>, vector<4x256xf32>, vector<4x256xf32>, vector<4x256xf32>, vector<4x256xf32>, vector<4x256xf32>, vector<4x256xf32> -> vector<36x256xf32>
    %c0_19 = arith.constant 0 : index
    %c0_20 = arith.constant 0 : index
    %52 = vector.load %arg2[%c0_19, %c0_20] : memref<8x36xf32, #tpu.memory_space<vmem>>, vector<8x36xf32>
    %cst_21 = arith.constant dense<0.000000e+00> : vector<8x256xf32>
    %53 = tpu.matmul %52, %51, %cst_21 {dimension_numbers = #tpu.dot_dimension_numbers<[1], [0], [0], [1], [0, 0, 1, 1], [], []>} : vector<8x36xf32>, vector<36x256xf32>, vector<8x256xf32> -> vector<8x256xf32>
    %c0_22 = arith.constant 0 : index
    %c0_23 = arith.constant 0 : index
    %54 = vector.load %arg3[%c0_22, %c0_23] : memref<8x1xf32, #tpu.memory_space<vmem>>, vector<8x1xf32>
    %55 = vector.broadcast %54 : vector<8x1xf32> to vector<8x256xf32>
    %56 = arith.addf %53, %55 : vector<8x256xf32>
    %cst_24 = arith.constant 0.000000e+00 : f32
    %57 = vector.broadcast %cst_24 : f32 to vector<8x256xf32>
    %58 = arith.maximumf %56, %57 : vector<8x256xf32>
    %cst_25 = arith.constant 0.000000e+00 : f32
    %59 = vector.broadcast %cst_25 : f32 to vector<8x512xf32>
    %c0_26 = arith.constant 0 : index
    %c0_27 = arith.constant 0 : index
    %60 = vector.load %arg8[%c0_26, %c0_27] : memref<8x512xf32, #tpu.memory_space<vmem>>, vector<8x512xf32>
    tpu.vector_store %arg8[%c0_26, %c0_27], %59 {strides = array<i32>} : memref<8x512xf32, #tpu.memory_space<vmem>>, vector<8x512xf32>,
    %c0_28 = arith.constant 0 : index
    %c128_29 = arith.constant 128 : index
    %61 = vector.load %arg8[%c0_28, %c128_29] : memref<8x512xf32, #tpu.memory_space<vmem>>, vector<8x256xf32>
    tpu.vector_store %arg8[%c0_28, %c128_29], %58 {strides = array<i32>} : memref<8x512xf32, #tpu.memory_space<vmem>>, vector<8x256xf32>,
    %c0_30 = arith.constant 0 : index
    %c111_31 = arith.constant 111 : index
    %62 = vector.load %arg8[%c0_30, %c111_31] : memref<8x512xf32, #tpu.memory_space<vmem>>, vector<8x256xf32>
    %63 = vector.broadcast %20 : vector<1x256xf32> to vector<8x256xf32>
    %64 = arith.mulf %62, %63 : vector<8x256xf32>
    %c0_32 = arith.constant 0 : index
    %c112_33 = arith.constant 112 : index
    %65 = vector.load %arg8[%c0_32, %c112_33] : memref<8x512xf32, #tpu.memory_space<vmem>>, vector<8x256xf32>
    %c0_34 = arith.constant 0 : index
    %c113_35 = arith.constant 113 : index
    %66 = vector.load %arg8[%c0_34, %c113_35] : memref<8x512xf32, #tpu.memory_space<vmem>>, vector<8x256xf32>
    %67 = vector.broadcast %24 : vector<1x256xf32> to vector<8x256xf32>
    %68 = arith.mulf %66, %67 : vector<8x256xf32>
    %c0_36 = arith.constant 0 : index
    %c127_37 = arith.constant 127 : index
    %69 = vector.load %arg8[%c0_36, %c127_37] : memref<8x512xf32, #tpu.memory_space<vmem>>, vector<8x256xf32>
    %70 = vector.broadcast %20 : vector<1x256xf32> to vector<8x256xf32>
    %71 = arith.mulf %69, %70 : vector<8x256xf32>
    %c0_38 = arith.constant 0 : index
    %c128_39 = arith.constant 128 : index
    %72 = vector.load %arg8[%c0_38, %c128_39] : memref<8x512xf32, #tpu.memory_space<vmem>>, vector<8x256xf32>
    %c0_40 = arith.constant 0 : index
    %c129_41 = arith.constant 129 : index
    %73 = vector.load %arg8[%c0_40, %c129_41] : memref<8x512xf32, #tpu.memory_space<vmem>>, vector<8x256xf32>
    %74 = vector.broadcast %24 : vector<1x256xf32> to vector<8x256xf32>
    %75 = arith.mulf %73, %74 : vector<8x256xf32>
    %c0_42 = arith.constant 0 : index
    %c143_43 = arith.constant 143 : index
    %76 = vector.load %arg8[%c0_42, %c143_43] : memref<8x512xf32, #tpu.memory_space<vmem>>, vector<8x256xf32>
    %77 = vector.broadcast %20 : vector<1x256xf32> to vector<8x256xf32>
    %78 = arith.mulf %76, %77 : vector<8x256xf32>
    %c0_44 = arith.constant 0 : index
    %c144_45 = arith.constant 144 : index
    %79 = vector.load %arg8[%c0_44, %c144_45] : memref<8x512xf32, #tpu.memory_space<vmem>>, vector<8x256xf32>
    %c0_46 = arith.constant 0 : index
    %c145_47 = arith.constant 145 : index
    %80 = vector.load %arg8[%c0_46, %c145_47] : memref<8x512xf32, #tpu.memory_space<vmem>>, vector<8x256xf32>
    %81 = vector.broadcast %24 : vector<1x256xf32> to vector<8x256xf32>
    %82 = arith.mulf %80, %81 : vector<8x256xf32>
    %83 = tpu.concatenate %64, %65, %68, %71, %72, %75, %78, %79, %82 in 0 : vector<8x256xf32>, vector<8x256xf32>, vector<8x256xf32>, vector<8x256xf32>, vector<8x256xf32>, vector<8x256xf32>, vector<8x256xf32>, vector<8x256xf32>, vector<8x256xf32> -> vector<72x256xf32>
    %c0_48 = arith.constant 0 : index
    %c0_49 = arith.constant 0 : index
    %84 = vector.load %arg4[%c0_48, %c0_49] : memref<8x72xf32, #tpu.memory_space<vmem>>, vector<8x72xf32>
    %cst_50 = arith.constant dense<0.000000e+00> : vector<8x256xf32>
    %85 = tpu.matmul %84, %83, %cst_50 {dimension_numbers = #tpu.dot_dimension_numbers<[1], [0], [0], [1], [0, 0, 1, 1], [], []>} : vector<8x72xf32>, vector<72x256xf32>, vector<8x256xf32> -> vector<8x256xf32>
    %c0_51 = arith.constant 0 : index
    %c0_52 = arith.constant 0 : index
    %86 = vector.load %arg5[%c0_51, %c0_52] : memref<8x1xf32, #tpu.memory_space<vmem>>, vector<8x1xf32>
    %87 = vector.broadcast %86 : vector<8x1xf32> to vector<8x256xf32>
    %88 = arith.addf %85, %87 : vector<8x256xf32>
    %cst_53 = arith.constant 0.000000e+00 : f32
    %89 = vector.broadcast %cst_53 : f32 to vector<8x256xf32>
    %90 = arith.maximumf %88, %89 : vector<8x256xf32>
    %c0_54 = arith.constant 0 : index
    %c0_55 = arith.constant 0 : index
    %c0_56 = arith.constant 0 : index
    %91 = vector.load %arg6[%c0_54, %c0_55, %c0_56] : memref<1x8x256xf32, #tpu.memory_space<vmem>>, vector<1x8x256xf32>
    %92 = vector.shape_cast %91 : vector<1x8x256xf32> to vector<8x256xf32>
    %93 = vector.shape_cast %90 : vector<8x256xf32> to vector<1x8x256xf32>
    tpu.vector_store %arg6[%c0_54, %c0_55, %c0_56], %93 {strides = array<i32>} : memref<1x8x256xf32, #tpu.memory_space<vmem>>, vector<1x8x256xf32>,
    return
  }
  func.func @transform_0(%arg0: i32) -> (i32, i32, i32) {
    %c0_i32 = arith.constant 0 : i32
    %c0_i32_0 = arith.constant 0 : i32
    %c0_i32_1 = arith.constant 0 : i32
    return %arg0, %c0_i32, %c0_i32_0 : i32, i32, i32
  }
  func.func @transform_1(%arg0: i32) -> (i32, i32) {
    %c0_i32 = arith.constant 0 : i32
    %c0_i32_0 = arith.constant 0 : i32
    %c0_i32_1 = arith.constant 0 : i32
    return %c0_i32, %c0_i32_0 : i32, i32
  }
  func.func @transform_2(%arg0: i32) -> (i32, i32) {
    %c0_i32 = arith.constant 0 : i32
    %c0_i32_0 = arith.constant 0 : i32
    %c0_i32_1 = arith.constant 0 : i32
    return %c0_i32, %c0_i32_0 : i32, i32
  }
  func.func @transform_3(%arg0: i32) -> (i32, i32) {
    %c0_i32 = arith.constant 0 : i32
    %c0_i32_0 = arith.constant 0 : i32
    %c0_i32_1 = arith.constant 0 : i32
    return %c0_i32, %c0_i32_0 : i32, i32
  }
  func.func @transform_4(%arg0: i32) -> (i32, i32) {
    %c0_i32 = arith.constant 0 : i32
    %c0_i32_0 = arith.constant 0 : i32
    %c0_i32_1 = arith.constant 0 : i32
    return %c0_i32, %c0_i32_0 : i32, i32
  }
  func.func @transform_5(%arg0: i32) -> (i32, i32, i32) {
    %c0_i32 = arith.constant 0 : i32
    %c0_i32_0 = arith.constant 0 : i32
    %c0_i32_1 = arith.constant 0 : i32
    return %arg0, %c0_i32, %c0_i32_0 : i32, i32, i32
  }
}

</mosaic_0001>

<bundles_post_ra>
// kernel: tpu_custom_call.1
= control target key start
LH: loop header
LB: loop body
LE: loop exit
PB: predicated region body
PF: predicated region fallthrough
CT: control target
= control target key end

     0   :  { %10 = vsyncpa [#allocation5], 0  ;;  %s1855_s0 = inlined_call_operand.vmem [shape: f32[2,4,256], index: 0, kind: input, shape index: {}]   ;;  %s1856_s1 = inlined_call_operand.hbm [shape: f32[8,36], index: 1, kind: input, shape index: {}]   ;;  %s1857_s2 = inlined_call_operand.vmem [shape: f32[8,1], index: 2, kind: input, shape index: {}]   ;;  %s1858_s3 = inlined_call_operand.vmem [shape: f32[8,72], index: 3, kind: input, shape index: {}]   ;;  %s1859_s4 = inlined_call_operand.vmem [shape: f32[8,1], index: 4, kind: input, shape index: {}]   ;;  %s1860_s5 = inlined_call_operand.hbm [shape: f32[2,8,256], index: 5, kind: output, shape index: {}]  }
   0x1   :  { %11 = vsyncpa [#allocation6], 0 }
   0x2   :  { %13 = vsyncpa [#allocation6 + $0x1], 0  ;;  %s1499_s18 = smov 0   ;;  %s1501_s19 = smov 0  }
   0x3   :  { %s1503_s20 = smov 0   ;;  %s1505_s21 = smov 0  }
   0x4 LB: > { %s1520_s22 = sadd.s32 4294967295, %s1451_s21   ;;  %s1048_s23 = sadd.s32 4294967294, %s1451_s21   ;;  %s1451_s21 = sphi %s1505_s21, %s1876_s21   ;;  %s1447_s20 = sphi %s1503_s20, %s1875_s20   ;;  %s1443_s19 = sphi %s1501_s19, %s1874_s19   ;;  %s1439_s18 = sphi %s1499_s18, %s1873_s18  }
   0x5   : > { %s1524_s24 = sadd.s32 1, %s1451_s21   ;;  %s136_s25 = sadd.s32 1, %s1447_s20 }
   0x6   : > { %s133_s26 = ssub.s32 %s1451_s21, %s1524_s24  ;;  %p146_p0 = scmp.ne.s32.totalorder %s1447_s20, %s1443_s19 }
   0x7   : > { %p134_p1 = scmp.eq.s32.totalorder %s133_s26, 0  ;;  %p147_p2 = scmp.eq.s32.totalorder %s1520_s22, 1 }
   0x8   : > { %p152_p3 = scmp.ne.s32.totalorder %s1443_s19, %s1439_s18  ;;  %p153_p4 = scmp.eq.s32.totalorder %s1048_s23, 1 }
   0x9   : > { %s1535_s27 = scalar_select %p134_p1, %s1447_s20, %s136_s25  }
   0xa   : > { %p1537_p5 = por %p147_p2, %p146_p0  ;;  %p1541_p6 = por %p153_p4, %p152_p3 }
   0xb   : > { %p1049_p7 = scmp.ge.s32.totalorder %s1451_s21, 1  ;;  %p160_p8 = scmp.lt.s32.totalorder %s1451_s21, 3 }
   0xc   : > { %s1864_s28 = scalar_select %p1537_p5, 1, 0 }
   0xd   : > { %s1865_s29 = scalar_select %p1541_p6, 1, 0 }
   0xe   : > { %p1861_p9 = scmp.eq.s32.totalorder %s1520_s22, 0  ;;  %p1548_p10 = pnand %p1049_p7, %p160_p8 }
   0xf   : > { %s1453_s6 = smov [#allocation4]   ;;  %s1357_s11 = scalar_lea.hbm %s1856_s1, 128 }
  0x10   : > { %s1866_s30 = scalar_select %p1548_p10, 1, 0 }
  0x11   : > { %s173_s7 = sshll.u32 %s1453_s6, 4  ;;  %p1102_p11 = pneg %p1548_p10  ;;  %s174_s7 = int_to_ptr.vmem [resolvable:$true] %s173_s7 }
  0x12   : > { %p1358_p13 = scmp.ne.s32.totalorder %s1856_s1, %s1357_s11  ;;  %p1364_p3 = scmp.lt.u32.totalorder %s1357_s11, %s1856_s1 }
  0x13   : > { %p1556_p12 = pnand %p1861_p9, %p1102_p11 }
  0x15   : > { %p1359_p0 = pneg %p1556_p12 }
  0x17   : > { %p1360_p1 = pnand %p1359_p0, %p1358_p13 }
  0x19   : > { %p1361_p2 = pneg %p1360_p1 }
  0x1b   : > { %p1366_p4 = pnand %p1364_p3, %p1361_p2 }
  0x1d   : > { %1369 = shalt.err (!%p1366_p4)
}
  0x1e   : > { %s1370_s16 = scalar_lea.vmem %s174_s7, 128  ;;  %p1378_p9 = scmp.lt.s32.totalorder %s174_s7, %s174_s7 }
  0x1f   : > { %p1371_p7 = scmp.ne.s32.totalorder %s174_s7, %s1370_s16  ;;  %p1379_p6 = scmp.lt.s32.totalorder %s1370_s16, %s1370_s16 }
  0x21   : > { %p1373_p8 = pnand %p1371_p7, %p1359_p0  ;;  %p1380_p5 = por %p1379_p6, %p1378_p9 }
  0x23   : > { %p1374_p11 = pneg %p1373_p8 }
  0x25   : > { %p1381_p10 = pnand %p1380_p5, %p1374_p11 }
  0x27   : > { %1384 = shalt.err (!%p1381_p10)
}
  0x28   : > { %1105 = dma.hbm_to_vmem [thread:$0]  (!%p1556_p12), %s1856_s1, 128, %s174_s7, [#allocation5]  }
  0x29   : > { %p1868_p13 = scmp.ne.s32.totalorder %s1866_s30, 0 }
  0x2a   : > { %v236_v0 = vlaneseq (!%p1868_p13)  ;;  %p1869_p1 = scmp.eq.s32.totalorder (!%p1868_p13), %s1520_s22, 0 }
  0x2b   : > { %203 = sbr.rel (%p1868_p13) target bundleno = 1165 (0x48d), region = 40 }
  0x32   : > { %1430 = dma.done.wait (%p1869_p1), [#allocation5], 128   ;;  %p1870_p0 = pmov %p1869_p1 }
  0x33   : > { %v1454_v1 = vmov 0.0   ;;  %v237_v2 = vand.u32 127, %v236_v0  ;;  %p231_p5 = scmp.lt.s32.totalorder %s1520_s22, 1  ;;  %s1455_s8 = smov 1   ;;  %vm299_vm4 = vcmask 924672   ;;  %vm320_vm5 = vcmask 7168  }
  0x34   : > { %1432 = vsyncadd (%p1870_p0), [#allocation5], 4294967168  ;;  %275 = vst [vmem:[#allocation2] sm:$0xff] %v1454_v1  ;;  %614 = vmatprep.mubr.f32.mxu0 %v1454_v1  ;;  %951 = vmatprep.mubr.f32.mxu1 %v1454_v1  ;;  %s1456_s9 = smov 113   ;;  %s1457_s10 = smov 15   ;;  %vm308_vm6 = vcmask 1039360  }
  0x35   : > { %276 = vst [vmem:[#allocation2 + $0x8] sm:$0xff] %v1454_v1  ;;  %v238_v3 = vadd.s32 128, %v237_v2  ;;  %v243_v4 = vand.u32 15, %v237_v2  ;;  %s232_s25 = scalar_select %p231_p5, %s1520_s22, 1  ;;  %vm329_vm7 = vcmask 121856   ;;  %vm287_vm8 = vcmask 908288  }
  0x36   : > { %s1458_s11 = smov 127   ;;  %s1459_s12 = smov 17   ;;  %vm462_vm9 = vcmask 1043456   ;;  %vm338_vm10 = vcmask 138240   ;;  %vm371_vm11 = vcmask 1031168   ;;  %vm387_vm12 = vcmask 916480  }
  0x37   : > { %v250_v5 = vand.u32 15, %v238_v3  ;;  %vm269_vm0 = vcmp.lt.s32.totalorder %v243_v4, 15  ;;  %vm263_vm1 = vcmp.gt.s32.totalorder %v243_v4, 0  ;;  %s1070_s26 = sshll.u32 %s232_s25, 3  ;;  %s1460_s13 = smov 111   ;;  %vm413_vm13 = vcmask 900096  }
  0x38   : > { %v1589_v6 = vsel %vm269_vm0, 1.0, %v1454_v1  ;;  %s235_s7 = scalar_lea.vmem %s1855_s0, %s1070_s26  ;;  %v1600_v9 = vsel %vm263_vm1, 1.0, %v1454_v1  ;;  %s1461_s14 = smov 95   ;;  %vm444_vm14 = vcmask 777216   ;;  %vm428_vm15 = vcmask 785408  }
  0x39   : > { %vm270_vm2 = vcmp.lt.s32.totalorder %v250_v5, 15  ;;  %vm264_vm3 = vcmp.gt.s32.totalorder %v250_v5, 0  ;;  %v1594_v7 = vld [vmem:[%s235_s7] sm:$0xff]  ;;  %s1462_s15 = smov 96   ;;  %s1463_s16 = smov 126   ;;  %vm459_vm0 = vcmask 769024  }
  0x3a   : > { %v1597_v8 = vsel %vm270_vm2, 1.0, %v1454_v1  ;;  %v1603_v10 = vsel %vm264_vm3, 1.0, %v1454_v1  ;;  %278 = vst [vmem:[#allocation2 + $0x4] sm:$0xff] %v1594_v7  ;;  %v436_v19 = vcombine.low %v1594_v7, %v1594_v7  ;;  %v394_v20 = vcombine.high %v1594_v7, %v1594_v7  ;;  %s1464_s17 = smov 112   ;;  %s1465_s23 = smov 110  }
  0x3b   : > { %v295_v11 = vcombine.low %v1589_v6, %v1597_v8  ;;  %v283_v12 = vcombine.low %v1600_v9, %v1603_v10  ;;  %s1466_s25 = smov 94   ;;  %vm542_vm1 = vcmask 293888   ;;  %vm883_vm2 = vcmask 588800   ;;  %p1871_p9 = scmp.ne.s32.totalorder %s1864_s28, 0 }
  0x3c   : > { %v1170_v21 = vpack.i.bf16 %v1594_v7, %v436_v19  ;;  %v316_v34 = vld [vmem:[#allocation2 + $0xc] sm:$0xf] }
  0x3d   : > { %317 = vrot.lane.b32.xlu1 %v295_v11, %s1455_s8  ;;  %296 = vrot.lane.b32.xlu0 %v295_v11, %s1456_s9  ;;  %v1160_v13 = vpack.i.bf16 %v1594_v7, %v283_v12  ;;  %v437_v5 = vcombine.low %v316_v34, %v316_v34 }
  0x41   : > { %326 = vrot.lane.b32.xlu1 %v283_v12, %s1457_s10  ;;  %305 = vrot.lane.b32.xlu0 %v283_v12, %s1458_s11  ;;  %v1615_v14 = vld [vmem:[#allocation2 + $0x8] sm:$0xf]  ;;  %v1617_v15 = vld [vmem:[#allocation2] sm:$0xff] }
  0x42   : > { %v350_v16 = vcombine.low %v1615_v14, %v1615_v14  ;;  %v349_v18 = vcombine.low %v1617_v15, %v1617_v15 }
  0x44   : > { %v1165_v17 = vpack.i.bf16 %v350_v16, %v1617_v15 }
  0x45   : > { %335 = vrot.lane.b32.xlu0 %v295_v11, %s1459_s12  ;;  %1161 = vrot.lane.b32.xlu1 %v1160_v13, %s1460_s13 }
  0x49   : > { %1166 = vrot.lane.b32.xlu0 %v1165_v17, %s1458_s11  ;;  %351 = vrot.lane.b32.xlu1 %v349_v18, %s1458_s11 }
  0x4d   : > { %397 = vrot.lane.b32.xlu0 %v394_v20, %s1460_s13  ;;  %1171 = vrot.lane.b32.xlu1 %v1170_v21, %s1461_s14 }
  0xaf   : > { %v318_v22 = vpop.permute.xlu1 %317  ;;  %v297_v23 = vpop.permute.xlu0 %296 }
  0xb0   : > { %v319_v24 = vrot.slane %v318_v22, 4  ;;  %v298_v25 = vrot.slane %v297_v23, 4 }
  0xb2   : > { %v300_v26 = vsel %vm299_vm4, %v298_v25, %v297_v23  ;;  %v304_v28 = vmul.f32 %v298_v25, %v1615_v14  ;;  %v321_v31 = vsel %vm320_vm5, %v319_v24, %v318_v22  ;;  %v325_v57 = vmul.f32 %v319_v24, %v316_v34 }
  0xb3   : > { %v303_v27 = vmul.f32 %v300_v26, %v1617_v15  ;;  %v327_v29 = vpop.permute.xlu1 %326  ;;  %v306_v30 = vpop.permute.xlu0 %305  ;;  %v324_v39 = vmul.f32 %v321_v31, %v1594_v7 }
  0xb4   : > { %v328_v32 = vrot.slane %v327_v29, 4  ;;  %v307_v33 = vrot.slane %v306_v30, 4  ;;  %v406_v0 = vcombine.low %v325_v57, %v325_v57 }
  0xb5   : > { %v364_v35 = vcombine.high %v303_v27, %v303_v27  ;;  %v405_v49 = vcombine.low %v324_v39, %v324_v39 }
  0xb6   : > { %v334_v36 = vmul.f32 %v328_v32, %v316_v34  ;;  %v309_v37 = vsel %vm308_vm6, %v307_v33, %v306_v30  ;;  %v313_v38 = vmul.f32 %v307_v33, %v1615_v14  ;;  %v330_v44 = vsel %vm329_vm7, %v328_v32, %v327_v29 }
  0xb7   : > { %v312_v40 = vmul.f32 %v309_v37, %v1617_v15  ;;  %v1180_v41 = vpack.i.bf16 %v304_v28, %v364_v35  ;;  %v336_v42 = vpop.permute.xlu0 %335  ;;  %v1643_v43 = vpop.permute.xlu1 %1161  ;;  %v333_v50 = vmul.f32 %v330_v44, %v1594_v7  ;;  %v1185_v61 = vpack.i.bf16 %v324_v39, %v405_v49 }
  0xb8   : > { %426 = vrot.lane.b32.xlu0 %v334_v36, %s1462_s15  ;;  %v1163_v45 = vunpack.i.l.bf16 %v1643_v43  ;;  %v380_v47 = vcombine.low %v313_v38, %v313_v38  ;;  %v337_v55 = vrot.slane %v336_v42, 4 }
  0xb9   : > { %1181 = vrot.lane.b32.xlu1 %v1180_v41, %s1463_s16  ;;  %v379_v46 = vcombine.low %v312_v40, %v312_v40  ;;  %v421_v60 = vcombine.high %v333_v50, %v333_v50 }
  0xba   : > { %v286_v48 = vrot.slane %v1163_v45, 4  ;;  %v1175_v58 = vpack.i.bf16 %v380_v47, %v312_v40  ;;  %v339_v63 = vsel %vm338_vm10, %v337_v55, %v336_v42  ;;  %v343_v16 = vmul.f32 %v337_v55, %v316_v34 }
  0xbb   : > { %v1167_v51 = vpop.permute.xlu0 %1166  ;;  %v352_v52 = vpop.permute.xlu1 %351  ;;  %v1190_v3 = vpack.i.bf16 %v421_v60, %v333_v50  ;;  %v342_v4 = vmul.f32 %v339_v63, %v1594_v7 }
  0xbc   : > { %365 = vrot.lane.b32.xlu0 %v303_v27, %s1463_s16  ;;  %v1168_v53 = vunpack.i.l.bf16 %v1167_v51  ;;  %v288_v54 = vsel %vm287_vm8, %v286_v48, %v1163_v45  ;;  %v1169_v2 = vunpack.i.h.bf16 %v1167_v51  ;;  %v292_v11 = vmul.f32 %v286_v48, %v1615_v14 }
  0xbd   : > { %381 = vrot.lane.b32.xlu1 %v379_v46, %s1464_s17  ;;  %v291_v56 = vmul.f32 %v288_v54, %v1617_v15  ;;  %v452_v15 = vcombine.high %v342_v4, %v342_v4  ;;  %v1164_v27 = vunpack.i.h.bf16 %v1643_v43 }
  0xbe   : > { %v357_v59 = vsel %vm308_vm6, %v352_v52, %v1168_v53  ;;  %v358_v13 = vsel %vm308_vm6, %v1168_v53, %v1169_v2  ;;  %v465_v7 = vsel %vm462_vm9, %v292_v11, %v1169_v2 }
  0xbf   : > { %v1656_v62 = vsel %vm462_vm9, %v291_v56, %v357_v59  ;;  %v345_v12 = vcombine.high %v291_v56, %v291_v56  ;;  %v1172_v14 = vpop.permute.xlu1 %1171  ;;  %v398_v19 = vpop.permute.xlu0 %397 }
  0xc0   : > { %1176 = vrot.lane.b32.xlu0 %v1175_v58, %s1464_s17  ;;  %v1174_v31 = vunpack.i.h.bf16 %v1172_v14  ;;  %v1173_v39 = vunpack.i.l.bf16 %v1172_v14  ;;  %v399_v44 = vsel %vm287_vm8, %v1164_v27, %v398_v19 }
  0xc1   : > { %1186 = vrot.lane.b32.xlu1 %v1185_v61, %s1465_s23  ;;  %v464_v17 = vsel %vm462_vm9, %v345_v12, %v358_v13  ;;  %v476_v13 = vld [vmem:[%s1857_s2] sm:$0xff] }
  0xc2   : > { %v1195_v18 = vpack.i.bf16 %v465_v7, %v464_v17  ;;  %v445_v56 = vsel %vm444_vm14, %v1173_v39, %v1174_v31 }
  0xc4   : > { %411 = vrot.lane.b32.xlu0 %v406_v0, %s1465_s23 }
  0xc5   : > { %1191 = vrot.lane.b32.xlu1 %v1190_v3, %s1462_s15 }
  0xc8   : > { %442 = vrot.lane.b32.xlu0 %v437_v5, %s1461_s14 }
  0xc9   : > { %453 = vrot.lane.b32.xlu1 %v342_v4, %s1466_s25  ;;  %v1467_v4 = vmov 0  }
  0xca   : > { %1225 = vset.pattern.permute.xlu1 %v1467_v4  ;;  %1351 = vset.pattern.permute.xlu0 %v1467_v4 }
  0xcc   : > { %455 = vrot.lane.b32.xlu0 %v452_v15, %s1466_s25  ;;  %v1226_v15 = vpack.i.bf16 %v1597_v8, %v1589_v6 }
  0xcd   : > { %457 = vrot.lane.b32.xlu1 %v343_v16, %s1466_s25  ;;  %v1231_v16 = vpack.i.bf16 %v1603_v10, %v1600_v9 }
  0xd0   : > { %1196 = vrot.lane.b32.xlu0 %v1195_v18, %s1459_s12 }
 0x12a   : > { %v427_v20 = vpop.permute.xlu0 %426 }
 0x12b   : > { %v1182_v21 = vpop.permute.xlu1 %1181 }
 0x12c   : > { %v1184_v24 = vunpack.i.h.bf16 %v1182_v21  ;;  %v1183_v25 = vunpack.i.l.bf16 %v1182_v21 }
 0x12e   : > { %v366_v22 = vpop.permute.xlu0 %365  ;;  %v373_v34 = vsel %vm371_vm11, %v1183_v25, %v1184_v24 }
 0x12f   : > { %v382_v23 = vpop.permute.xlu1 %381  ;;  %v372_v35 = vsel %vm371_vm11, %v366_v22, %v1183_v25 }
 0x132   : > { %v1177_v26 = vpop.permute.xlu0 %1176 }
 0x133   : > { %v1179_v28 = vunpack.i.h.bf16 %v1177_v26  ;;  %v1178_v29 = vunpack.i.l.bf16 %v1177_v26  ;;  %v1187_v30 = vpop.permute.xlu1 %1186 }
 0x134   : > { %v1189_v32 = vunpack.i.h.bf16 %v1187_v30  ;;  %v1188_v33 = vunpack.i.l.bf16 %v1187_v30 }
 0x135   : > { %v388_v36 = vsel %vm387_vm12, %v382_v23, %v1178_v29  ;;  %v389_v37 = vsel %vm387_vm12, %v1178_v29, %v1179_v28  ;;  %v468_v38 = vsel %vm462_vm9, %v1184_v24, %v1179_v28 }
 0x136   : > { %v412_v40 = vpop.permute.xlu0 %411  ;;  %v467_v41 = vsel %vm462_vm9, %v373_v34, %v389_v37  ;;  %v466_v42 = vsel %vm462_vm9, %v372_v35, %v388_v36  ;;  %v414_v43 = vsel %vm413_vm13, %v1188_v33, %v1189_v32  ;;  %v469_v0 = vsel %vm462_vm9, %v1164_v27, %v1188_v33 }
 0x137   : > { %v415_v45 = vsel %vm413_vm13, %v1189_v32, %v412_v40  ;;  %v1192_v46 = vpop.permute.xlu1 %1191  ;;  %v1200_v47 = vpack.i.bf16 %v468_v38, %v467_v41  ;;  %v1205_v48 = vpack.i.bf16 %v466_v42, %v1656_v62  ;;  %v470_v52 = vsel %vm462_vm9, %v399_v44, %v414_v43 }
 0x138   : > { %v471_v49 = vsel %vm462_vm9, %v398_v19, %v415_v45  ;;  %v1194_v50 = vunpack.i.h.bf16 %v1192_v46  ;;  %v1193_v51 = vunpack.i.l.bf16 %v1192_v46  ;;  %v475_v45 = vld [vmem:[#allocation4] sm:$0xff] }
 0x139   : > { %1201 = vrot.lane.b32.xlu1 %v1200_v47, %s1459_s12  ;;  %1206 = vrot.lane.b32.xlu0 %v1205_v48, %s1459_s12  ;;  %v1210_v59 = vpack.i.bf16 %v471_v49, %v470_v52 }
 0x13a   : > { %v429_v53 = vsel %vm428_vm15, %v1193_v51, %v1194_v50  ;;  %v443_v54 = vpop.permute.xlu0 %442  ;;  %v430_v55 = vsel %vm428_vm15, %v1194_v50, %v427_v20  ;;  %v472_v62 = vsel %vm462_vm9, %v1193_v51, %v1173_v39 }
 0x13b   : > { %v446_v57 = vsel %vm444_vm14, %v1174_v31, %v443_v54  ;;  %v454_v58 = vpop.permute.xlu1 %453  ;;  %v473_v60 = vsel %vm462_vm9, %v429_v53, %v445_v56  ;;  %v1215_v3 = vpack.i.bf16 %v472_v62, %v469_v0 }
 0x13c   : > { %v474_v61 = vsel %vm462_vm9, %v430_v55, %v446_v57 }
 0x13d   : > { %1211 = vrot.lane.b32.xlu1 %v1210_v59, %s1459_s12  ;;  %v1220_v63 = vpack.i.bf16 %v474_v61, %v473_v60 }
 0x13e   : > { %v456_v2 = vpop.permute.xlu0 %455 }
 0x13f   : > { %1221 = vrot.lane.b32.xlu0 %v1220_v63, %s1459_s12  ;;  %v458_v5 = vpop.permute.xlu1 %457  ;;  %v460_v11 = vsel %vm459_vm0, %v454_v58, %v456_v2 }
 0x140   : > { %v461_v12 = vsel %vm459_vm0, %v456_v2, %v458_v5 }
 0x141   : > { %1216 = vrot.lane.b32.xlu1 %v1215_v3, %s1459_s12 }
 0x142   : > { %v1197_v6 = vpop.permute.xlu0 %1196 }
 0x143   : > { %520 = vrot.lane.b32.xlu0 %v460_v11, %s1459_s12  ;;  %v1199_v8 = vunpack.i.h.bf16 %v1197_v6  ;;  %v1198_v17 = vunpack.i.l.bf16 %v1197_v6 }
 0x145   : > { %522 = vrot.lane.b32.xlu1 %v461_v12, %s1459_s12  ;;  %v525_v20 = vsel %vm338_vm10, %v1198_v17, %v1199_v8 }
 0x147   : > { %518 = vrot.lane.b32.xlu0 %v454_v58, %s1459_s12 }
 0x149   : > { %479 = vperm.xlu1 %1225, %v476_v13  }
 0x14b   : > { %1227 = vrot.lane.b32.xlu0 %v1226_v15, %s1456_s9 }
 0x14d   : > { %1232 = vrot.lane.b32.xlu1 %v1231_v16, %s1458_s11 }
 0x14f   : > { %1237 = vrot.lane.b32.xlu0 %v1226_v15, %s1455_s8 }
 0x151   : > { %1242 = vrot.lane.b32.xlu1 %v1231_v16, %s1457_s10  ;;  %s228_s10 = sand.u32 1, %s1443_s19  }
 0x153   : > { %1247 = vrot.lane.b32.xlu0 %v1226_v15, %s1459_s12 }
 0x155   : > { %1252 = vrot.lane.b32.xlu1 %v1231_v16, %s1460_s13 }
 0x159   : > { %704 = vrot.lane.b32.xlu1 %v1454_v1, %s1458_s11 }
 0x1ab   : > { %v1202_v7 = vpop.permute.xlu1 %1201  ;;  %v1207_v9 = vpop.permute.xlu0 %1206 }
 0x1ac   : > { %v1204_v10 = vunpack.i.h.bf16 %v1202_v7  ;;  %v1203_v18 = vunpack.i.l.bf16 %v1202_v7  ;;  %v1209_v14 = vunpack.i.h.bf16 %v1207_v9  ;;  %v1208_v19 = vunpack.i.l.bf16 %v1207_v9 }
 0x1ae   : > { %v527_v21 = vsel %vm338_vm10, %v1203_v18, %v1204_v10  ;;  %v524_v22 = vsel %vm338_vm10, %v1208_v19, %v1198_v17  ;;  %v526_v23 = vsel %vm338_vm10, %v1209_v14, %v1203_v18 }
 0x1af   : > { %v1212_v24 = vpop.permute.xlu1 %1211  ;;  %v1072_v25 = vpack.c.bf16 %v527_v21, %v525_v20  ;;  %v1074_v26 = vpack.c.bf16 %v526_v23, %v524_v22 }
 0x1b0   : > { %v1214_v27 = vunpack.i.h.bf16 %v1212_v24  ;;  %v1213_v28 = vunpack.i.l.bf16 %v1212_v24 }
 0x1b1   : > { %v1222_v29 = vpop.permute.xlu0 %1221  ;;  %1073 = vmatprep.subr.bf16.mxu0 %v1072_v25 }
 0x1b2   : > { %v1224_v30 = vunpack.i.h.bf16 %v1222_v29  ;;  %v1223_v31 = vunpack.i.l.bf16 %v1222_v29  ;;  %1075 = vmatpush1.bf16.msra.mxu0 %v1074_v26  ;;  %v529_v35 = vsel %vm338_vm10, %v1213_v28, %v1214_v27 }
 0x1b3   : > { %v1217_v32 = vpop.permute.xlu1 %1216 }
 0x1b4   : > { %v1219_v33 = vunpack.i.h.bf16 %v1217_v32  ;;  %v1218_v34 = vunpack.i.l.bf16 %v1217_v32  ;;  %v531_v36 = vsel %vm338_vm10, %v1223_v31, %v1224_v30 }
 0x1b5   : > { %v521_v37 = vpop.permute.xlu0 %520  ;;  %v1076_v38 = vpack.c.bf16 %v531_v36, %v529_v35 }
 0x1b6   : > { %v528_v39 = vsel %vm338_vm10, %v1218_v34, %v1213_v28  ;;  %v530_v40 = vsel %vm338_vm10, %v1219_v33, %v1223_v31 }
 0x1b7   : > { %v523_v41 = vpop.permute.xlu1 %522  ;;  %1077 = vmatprep.subr.bf16.mxu0 %v1076_v38  ;;  %v1078_v42 = vpack.c.bf16 %v530_v40, %v528_v39 }
 0x1b8   : > { %v533_v43 = vsel %vm338_vm10, %v521_v37, %v523_v41 }
 0x1b9   : > { %v519_v44 = vpop.permute.xlu0 %518  ;;  %1079 = vmatpush1.bf16.msra.mxu0 %v1078_v42 }
 0x1ba   : > { %1061 = vmatprep.subr.msk.mxu0 %vm462_vm9, %v533_v43  ;;  %v532_v46 = vsel %vm338_vm10, %v519_v44, %v521_v37 }
 0x1bd   : > { %1062 = vmatpush1.msk.msra.mxu0 %vm462_vm9, %v532_v46  ;;  %v1228_v47 = vpop.permute.xlu0 %1227 }
 0x1be   : > { %1063 = vmatmul.mubr.msk.f32.vlgmr.msra.gmra.mrb[0].mxu0 %vm542_vm1, %v475_v45  ;;  %v1230_v48 = vunpack.i.h.bf16 %v1228_v47  ;;  %v1229_v49 = vunpack.i.l.bf16 %v1228_v47 }
 0x1c0   : > { %v647_v50 = vsel %vm299_vm4, %v1229_v49, %v1230_v48  ;;  %v651_v51 = vmul.f32 0.0, %v1229_v49 }
 0x1c1   : > { %v1238_v52 = vpop.permute.xlu0 %1237 }
 0x1c2   : > { %v1240_v53 = vunpack.i.h.bf16 %v1238_v52  ;;  %715 = vrot.lane.b32.xlu0 %v651_v51, %s1463_s16  ;;  %v1239_v2 = vunpack.i.l.bf16 %v1238_v52 }
 0x1c4   : > { %v678_v54 = vmul.f32 0.0, %v1240_v53  ;;  %v672_v6 = vsel %vm320_vm5, %v1239_v2, %v1240_v53 }
 0x1c5   : > { %v1248_v30 = vpop.permute.xlu0 %1247 }
 0x1c6   : > { %746 = vrot.lane.b32.xlu0 %v678_v54, %s1465_s23  ;;  %v1249_v32 = vunpack.i.l.bf16 %v1248_v30  ;;  %v1250_v33 = vunpack.i.h.bf16 %v1248_v30 }
 0x1c8   : > { %v480_v55 = vpop.permute.xlu1 %479  ;;  %v694_v35 = vsel %vm338_vm10, %v1249_v32, %v1250_v33  ;;  %v700_v36 = vmul.f32 0.0, %v1250_v33 }
 0x1cc   : > { %v1233_v56 = vpop.permute.xlu1 %1232 }
 0x1cd   : > { %v1235_v57 = vunpack.i.h.bf16 %v1233_v56  ;;  %v1234_v58 = vunpack.i.l.bf16 %v1233_v56 }
 0x1cf   : > { %v658_v59 = vsel %vm308_vm6, %v1234_v58, %v1235_v57  ;;  %v662_v60 = vmul.f32 0.0, %v1234_v58 }
 0x1d0   : > { %v1243_v61 = vpop.permute.xlu1 %1242 }
 0x1d1   : > { %726 = vrot.lane.b32.xlu1 %v662_v60, %s1464_s17  ;;  %v1245_v63 = vunpack.i.h.bf16 %v1243_v61  ;;  %v1244_v0 = vunpack.i.l.bf16 %v1243_v61 }
 0x1d3   : > { %v683_v16 = vsel %vm329_vm7, %v1244_v0, %v1245_v63  ;;  %v689_v31 = vmul.f32 0.0, %v1245_v63 }
 0x1d4   : > { %v1253_v62 = vpop.permute.xlu1 %1252 }
 0x1d5   : > { %v1255_v5 = vunpack.i.h.bf16 %v1253_v62  ;;  %v1254_v11 = vunpack.i.l.bf16 %v1253_v62 }
 0x1d7   : > { %v636_v17 = vsel %vm287_vm8, %v1254_v11, %v1255_v5  ;;  %v640_v46 = vmul.f32 0.0, %v1254_v11 }
 0x1d8   : > { %v705_v38 = vpop.permute.xlu1 %704 }
 0x234   : > { %v716_v39 = vpop.permute.xlu0 %715 }
 0x238   : > { %v747_v41 = vpop.permute.xlu0 %746 }
 0x243   : > { %v727_v40 = vpop.permute.xlu1 %726 }
 0x291   : > { %v616_v3 = vpop.f32.mrb[0].mxu0 }
 0x292   : > { %v617_v4 = vadd.f32 %v616_v3, %v480_v55  ;;  %v618_v12 = vpop.f32.mrb[1].mxu0 }
 0x293   : > { %v619_v13 = vadd.f32 %v618_v12, %v480_v55 }
 0x294   : > { %v621_v15 = vmax.f32 %v617_v4, 0.0 }
 0x295   : > { %v622_v8 = vmax.f32 %v619_v13, 0.0 }
 0x296   : > { %v663_v7 = vmul.f32 %v658_v59, %v621_v15  ;;  %v676_v9 = vmul.f32 %v1239_v2, %v621_v15  ;;  %v652_v10 = vmul.f32 %v647_v50, %v621_v15  ;;  %v687_v21 = vmul.f32 %v1244_v0, %v621_v15 }
 0x297   : > { %v1271_v18 = vpack.i.bf16 %v622_v8, %v621_v15  ;;  %v664_v14 = vmul.f32 %v1235_v57, %v622_v8  ;;  %v677_v19 = vmul.f32 %v672_v6, %v622_v8  ;;  %v653_v20 = vmul.f32 %v1230_v48, %v622_v8 }
 0x298   : > { %v688_v22 = vmul.f32 %v683_v16, %v622_v8  ;;  %v641_v24 = vmul.f32 %v636_v17, %v621_v15  ;;  %v642_v28 = vmul.f32 %v1255_v5, %v622_v8  ;;  %v698_v34 = vmul.f32 %v1249_v32, %v621_v15 }
 0x299   : > { %1272 = vrot.lane.b32.xlu1 %v1271_v18, %s1461_s14  ;;  %1257 = vrot.lane.b32.xlu0 %v1271_v18, %s1458_s11  ;;  %v1276_v23 = vpack.i.bf16 %v664_v14, %v663_v7  ;;  %v1281_v25 = vpack.i.bf16 %v677_v19, %v676_v9  ;;  %v1266_v26 = vpack.i.bf16 %v653_v20, %v652_v10  ;;  %s1054_s11 = sshll.u32 %s228_s10, 4 }
 0x29a   : > { %v1286_v27 = vpack.i.bf16 %v688_v22, %v687_v21  ;;  %v1291_v29 = vpack.i.bf16 %v642_v28, %v641_v24  ;;  %v699_v37 = vmul.f32 %v694_v35, %v622_v8 }
 0x29d   : > { %1262 = vrot.lane.b32.xlu0 %v1271_v18, %s1460_s13  ;;  %1277 = vrot.lane.b32.xlu1 %v1276_v23, %s1464_s17  ;;  %s230_s13 = scalar_lea.vmem [#allocation7], %s1054_s11 }
 0x2a1   : > { %1282 = vrot.lane.b32.xlu1 %v1281_v25, %s1465_s23  ;;  %1267 = vrot.lane.b32.xlu0 %v1266_v26, %s1463_s16  ;;  %s963_s23 = scalar_lea.sflag [#allocation6], %s228_s10 }
 0x2a5   : > { %1287 = vrot.lane.b32.xlu1 %v1286_v27, %s1462_s15  ;;  %757 = vrot.lane.b32.xlu0 %v689_v31, %s1462_s15  ;;  %v784_v31 = vld [vmem:[%s1859_s4] sm:$0xff] }
 0x2a9   : > { %775 = vrot.lane.b32.xlu1 %v698_v34, %s1466_s25  ;;  %768 = vrot.lane.b32.xlu0 %v1454_v1, %s1461_s14  ;;  %s977_s14 = sshll.u32 %s230_s13, 4  ;;  %s1815_s14 = int_to_ptr.vmem [resolvable:$true] %s977_s14 }
 0x2ad   : > { %779 = vrot.lane.b32.xlu1 %v700_v36, %s1466_s25  ;;  %777 = vrot.lane.b32.xlu0 %v699_v37, %s1466_s25  ;;  %s1385_s25 = scalar_lea.vmem %s1815_s14, 256 }
 0x2ae   : > { %p1386_p6 = scmp.ne.s32.totalorder %s1815_s14, %s1385_s25 }
 0x2b0   : > { %p1387_p10 = pnand %p1386_p6, %p1871_p9 }
 0x2b1   : > { %1292 = vrot.lane.b32.xlu0 %v1291_v29, %s1459_s12 }
 0x2b2   : > { %p1388_p12 = pneg %p1387_p10 }
 0x30b   : > { %v1273_v42 = vpop.permute.xlu1 %1272  ;;  %v1258_v43 = vpop.permute.xlu0 %1257 }
 0x30c   : > { %v1260_v44 = vunpack.i.h.bf16 %v1258_v43  ;;  %v1259_v45 = vunpack.i.l.bf16 %v1258_v43  ;;  %v1275_v15 = vunpack.i.h.bf16 %v1273_v42  ;;  %v1274_v16 = vunpack.i.l.bf16 %v1273_v42 }
 0x30e   : > { %v711_v47 = vsel %vm308_vm6, %v1259_v45, %v1260_v44  ;;  %v710_v1 = vsel %vm308_vm6, %v705_v38, %v1259_v45  ;;  %v770_v19 = vsel %vm444_vm14, %v1274_v16, %v1275_v15 }
 0x30f   : > { %v1301_v48 = vpack.i.bf16 %v1260_v44, %v711_v47  ;;  %v1263_v49 = vpop.permute.xlu0 %1262  ;;  %v1278_v50 = vpop.permute.xlu1 %1277  ;;  %v1296_v51 = vpack.i.bf16 %v710_v1, %v640_v46 }
 0x310   : > { %v1265_v52 = vunpack.i.h.bf16 %v1263_v49  ;;  %v1264_v53 = vunpack.i.l.bf16 %v1263_v49  ;;  %v1280_v54 = vunpack.i.h.bf16 %v1278_v50  ;;  %v1279_v55 = vunpack.i.l.bf16 %v1278_v50 }
 0x311   : > { %1302 = vrot.lane.b32.xlu1 %v1301_v48, %s1459_s12  ;;  %1297 = vrot.lane.b32.xlu0 %v1296_v51, %s1459_s12 }
 0x312   : > { %v738_v56 = vsel %vm287_vm8, %v1264_v53, %v1265_v52  ;;  %v733_v60 = vsel %vm387_vm12, %v1279_v55, %v1280_v54  ;;  %v732_v0 = vsel %vm387_vm12, %v727_v40, %v1279_v55 }
 0x313   : > { %v1306_v57 = vpack.i.bf16 %v1265_v52, %v738_v56  ;;  %v1283_v58 = vpop.permute.xlu1 %1282  ;;  %v1268_v59 = vpop.permute.xlu0 %1267  ;;  %v1321_v2 = vpack.i.bf16 %v1280_v54, %v733_v60 }
 0x314   : > { %v1270_v61 = vunpack.i.h.bf16 %v1268_v59  ;;  %v1269_v62 = vunpack.i.l.bf16 %v1268_v59  ;;  %v1285_v3 = vunpack.i.h.bf16 %v1283_v58  ;;  %v1284_v4 = vunpack.i.l.bf16 %v1283_v58 }
 0x315   : > { %1307 = vrot.lane.b32.xlu0 %v1306_v57, %s1459_s12 }
 0x316   : > { %v721_v63 = vsel %vm371_vm11, %v716_v39, %v1269_v62  ;;  %v722_v12 = vsel %vm371_vm11, %v1269_v62, %v1270_v61  ;;  %v1326_v6 = vpack.i.bf16 %v1284_v4, %v1264_v53  ;;  %v748_v7 = vsel %vm413_vm13, %v1284_v4, %v1285_v3 }
 0x317   : > { %v758_v5 = vpop.permute.xlu0 %757  ;;  %v1311_v11 = vpack.i.bf16 %v732_v0, %v721_v63  ;;  %v1288_v13 = vpop.permute.xlu1 %1287  ;;  %v1316_v8 = vpack.i.bf16 %v1270_v61, %v722_v12  ;;  %v749_v14 = vsel %vm413_vm13, %v1285_v3, %v747_v41 }
 0x318   : > { %v1290_v9 = vunpack.i.h.bf16 %v1288_v13  ;;  %v1289_v10 = vunpack.i.l.bf16 %v1288_v13  ;;  %v1336_v21 = vpack.i.bf16 %v749_v14, %v748_v7 }
 0x319   : > { %1312 = vrot.lane.b32.xlu1 %v1311_v11, %s1459_s12  ;;  %1322 = vrot.lane.b32.xlu0 %v1321_v2, %s1459_s12 }
 0x31a   : > { %v759_v22 = vsel %vm428_vm15, %v1289_v10, %v1290_v9  ;;  %v760_v23 = vsel %vm428_vm15, %v1290_v9, %v758_v5  ;;  %v1346_v28 = vpack.i.bf16 %v1274_v16, %v1289_v10 }
 0x31b   : > { %v769_v17 = vpop.permute.xlu0 %768  ;;  %v1341_v25 = vpack.i.bf16 %v760_v23, %v759_v22  ;;  %v776_v26 = vpop.permute.xlu1 %775 }
 0x31c   : > { %v771_v18 = vsel %vm444_vm14, %v1275_v15, %v769_v17 }
 0x31d   : > { %1317 = vrot.lane.b32.xlu1 %v1316_v8, %s1459_s12  ;;  %1327 = vrot.lane.b32.xlu0 %v1326_v6, %s1459_s12  ;;  %v1331_v20 = vpack.i.bf16 %v771_v18, %v770_v19 }
 0x31f   : > { %v778_v24 = vpop.permute.xlu0 %777  ;;  %v780_v29 = vpop.permute.xlu1 %779 }
 0x320   : > { %v781_v27 = vsel %vm459_vm0, %v776_v26, %v778_v24  ;;  %v782_v30 = vsel %vm459_vm0, %v778_v24, %v780_v29 }
 0x321   : > { %1337 = vrot.lane.b32.xlu1 %v1336_v21, %s1459_s12  ;;  %1332 = vrot.lane.b32.xlu0 %v1331_v20, %s1459_s12 }
 0x323   : > { %v1293_v32 = vpop.permute.xlu0 %1292 }
 0x324   : > { %v1295_v33 = vunpack.i.h.bf16 %v1293_v32  ;;  %v1294_v34 = vunpack.i.l.bf16 %v1293_v32  ;;  %v783_v32 = vld [vmem:[%s1858_s3] sm:$0xff] }
 0x325   : > { %1342 = vrot.lane.b32.xlu1 %v1341_v25, %s1459_s12  ;;  %843 = vrot.lane.b32.xlu0 %v781_v27, %s1459_s12 }
 0x326   : > { %v848_v41 = vsel %vm338_vm10, %v1294_v34, %v1295_v33 }
 0x329   : > { %1347 = vrot.lane.b32.xlu1 %v1346_v28, %s1459_s12  ;;  %841 = vrot.lane.b32.xlu0 %v776_v26, %s1459_s12 }
 0x32d   : > { %845 = vrot.lane.b32.xlu1 %v782_v30, %s1459_s12  ;;  %s1071_s12 = sshll.u32 %s1520_s22, 8  ;;  %s1468_s22 = smov [#allocation7]  }
 0x32e   : > { %s1813_s17 = scalar_lea.hbm %s1860_s5, %s1071_s12  ;;  %s1389_s26 = sshll.u32 %s1468_s22, 4  ;;  %s1390_s26 = int_to_ptr.vmem [resolvable:$false] %s1389_s26 }
 0x32f   : > { %s1391_s30 = scalar_lea.vmem %s1390_s26, 512  ;;  %p1392_p2 = scmp.lt.s32.totalorder %s1815_s14, %s1390_s26 }
 0x330   : > { %p1393_p3 = scmp.lt.s32.totalorder %s1391_s30, %s1385_s25 }
 0x331   : > { %787 = vperm.xlu1 %1225, %v784_v31  }
 0x332   : > { %p1394_p4 = por %p1393_p3, %p1392_p2 }
 0x334   : > { %p1395_p7 = pnand %p1394_p4, %p1388_p12 }
 0x383   : > { %v1303_v35 = vpop.permute.xlu1 %1302  ;;  %v1298_v36 = vpop.permute.xlu0 %1297 }
 0x384   : > { %v1305_v37 = vunpack.i.h.bf16 %v1303_v35  ;;  %v1304_v38 = vunpack.i.l.bf16 %v1303_v35  ;;  %v1300_v39 = vunpack.i.h.bf16 %v1298_v36  ;;  %v1299_v40 = vunpack.i.l.bf16 %v1298_v36 }
 0x386   : > { %v850_v42 = vsel %vm338_vm10, %v1304_v38, %v1305_v37  ;;  %v847_v43 = vsel %vm338_vm10, %v1299_v40, %v1294_v34  ;;  %v849_v44 = vsel %vm338_vm10, %v1300_v39, %v1304_v38 }
 0x387   : > { %v1308_v45 = vpop.permute.xlu0 %1307  ;;  %v1080_v46 = vpack.c.bf16 %v850_v42, %v848_v41  ;;  %v1082_v47 = vpack.c.bf16 %v849_v44, %v847_v43 }
 0x388   : > { %v1310_v57 = vunpack.i.h.bf16 %v1308_v45  ;;  %v1309_v58 = vunpack.i.l.bf16 %v1308_v45 }
 0x389   : > { %1081 = vmatprep.subr.bf16.mxu1 %v1080_v46 }
 0x38a   : > { %1083 = vmatpush1.bf16.msra.mxu1 %v1082_v47  ;;  %v856_v13 = vsel %vm338_vm10, %v1309_v58, %v1310_v57 }
 0x38b   : > { %v1313_v1 = vpop.permute.xlu1 %1312  ;;  %v1323_v48 = vpop.permute.xlu0 %1322 }
 0x38c   : > { %v1315_v49 = vunpack.i.h.bf16 %v1313_v1  ;;  %v1325_v50 = vunpack.i.h.bf16 %v1323_v48  ;;  %v1324_v51 = vunpack.i.l.bf16 %v1323_v48  ;;  %v1314_v54 = vunpack.i.l.bf16 %v1313_v1 }
 0x38e   : > { %v854_v61 = vsel %vm338_vm10, %v1324_v51, %v1325_v50  ;;  %v853_v63 = vsel %vm338_vm10, %v1315_v49, %v1324_v51 }
 0x38f   : > { %v1318_v52 = vpop.permute.xlu1 %1317  ;;  %v1328_v53 = vpop.permute.xlu0 %1327 }
 0x390   : > { %v1320_v55 = vunpack.i.h.bf16 %v1318_v52  ;;  %v1319_v56 = vunpack.i.l.bf16 %v1318_v52  ;;  %v1329_v59 = vunpack.i.l.bf16 %v1328_v53  ;;  %v1330_v5 = vunpack.i.h.bf16 %v1328_v53 }
 0x392   : > { %v852_v60 = vsel %vm338_vm10, %v1319_v56, %v1320_v55  ;;  %v851_v62 = vsel %vm338_vm10, %v1314_v54, %v1319_v56  ;;  %v855_v15 = vsel %vm338_vm10, %v1329_v59, %v1309_v58 }
 0x393   : > { %v1338_v0 = vpop.permute.xlu1 %1337  ;;  %v1333_v2 = vpop.permute.xlu0 %1332  ;;  %v1084_v3 = vpack.c.bf16 %v854_v61, %v852_v60  ;;  %v1086_v4 = vpack.c.bf16 %v853_v63, %v851_v62 }
 0x394   : > { %v1340_v11 = vunpack.i.h.bf16 %v1338_v0  ;;  %v1339_v12 = vunpack.i.l.bf16 %v1338_v0  ;;  %v1335_v16 = vunpack.i.h.bf16 %v1333_v2  ;;  %v1334_v6 = vunpack.i.l.bf16 %v1333_v2 }
 0x395   : > { %1085 = vmatprep.subr.bf16.mxu1 %v1084_v3 }
 0x396   : > { %1087 = vmatpush1.bf16.msra.mxu1 %v1086_v4  ;;  %v858_v8 = vsel %vm338_vm10, %v1339_v12, %v1340_v11  ;;  %v857_v17 = vsel %vm338_vm10, %v1330_v5, %v1339_v12  ;;  %v862_v20 = vsel %vm338_vm10, %v1334_v6, %v1335_v16 }
 0x397   : > { %v1343_v7 = vpop.permute.xlu1 %1342  ;;  %v1088_v9 = vpack.c.bf16 %v858_v8, %v856_v13  ;;  %v1090_v10 = vpack.c.bf16 %v857_v17, %v855_v15  ;;  %v844_v21 = vpop.permute.xlu0 %843 }
 0x398   : > { %v1345_v18 = vunpack.i.h.bf16 %v1343_v7  ;;  %v1344_v14 = vunpack.i.l.bf16 %v1343_v7 }
 0x399   : > { %1089 = vmatprep.subr.bf16.mxu1 %v1088_v9 }
 0x39a   : > { %1091 = vmatpush1.bf16.msra.mxu1 %v1090_v10  ;;  %v860_v19 = vsel %vm338_vm10, %v1344_v14, %v1345_v18 }
 0x39b   : > { %v1348_v22 = vpop.permute.xlu1 %1347  ;;  %v1092_v23 = vpack.c.bf16 %v862_v20, %v860_v19  ;;  %v842_v31 = vpop.permute.xlu0 %841 }
 0x39c   : > { %v1350_v24 = vunpack.i.h.bf16 %v1348_v22  ;;  %v1349_v25 = vunpack.i.l.bf16 %v1348_v22  ;;  %v863_v33 = vsel %vm338_vm10, %v842_v31, %v844_v21 }
 0x39d   : > { %1093 = vmatprep.subr.bf16.mxu1 %v1092_v23 }
 0x39e   : > { %v859_v26 = vsel %vm338_vm10, %v1349_v25, %v1344_v14  ;;  %v861_v27 = vsel %vm338_vm10, %v1350_v24, %v1334_v6 }
 0x39f   : > { %v846_v28 = vpop.permute.xlu1 %845  ;;  %v1094_v29 = vpack.c.bf16 %v861_v27, %v859_v26 }
 0x3a0   : > { %v864_v30 = vsel %vm338_vm10, %v844_v21, %v846_v28 }
 0x3a1   : > { %1095 = vmatpush1.bf16.msra.mxu1 %v1094_v29 }
 0x3a2   : > { %903 = vmatprep.subr.mxu1 %v864_v30 }
 0x3a5   : > { %904 = vmatpush1.msra.mxu1 %v863_v33 }
 0x3a6   : > { %1064 = vmatmul.mubr.msk.f32.vlgmr.msra.gmra.mrb[0].mxu1 %vm883_vm2, %v783_v32 }
 0x3b0   : > { %v788_v34 = vpop.permute.xlu1 %787 }
 0x479   : > { %v953_v35 = vpop.f32.mrb[0].mxu1 }
 0x47a   : > { %v954_v36 = vadd.f32 %v953_v35, %v788_v34  ;;  %v955_v37 = vpop.f32.mrb[1].mxu1 }
 0x47b   : > { %v956_v38 = vadd.f32 %v955_v37, %v788_v34 }
 0x47c   : > { %v958_v39 = vmax.f32 %v954_v36, 0.0 }
 0x47d   : > { %v959_v40 = vmax.f32 %v956_v38, 0.0 }
 0x47e   : > { %960 = vst [vmem:[%s230_s13] sm:$0xff] %v958_v39 }
 0x47f   : > { %961 = vst [vmem:[%s230_s13 + $0x8] sm:$0xff] %v959_v40 }
 0x480   : > { %1398 = shalt.err (!%p1395_p7)
}
 0x481   : > { %s1399_s6 = scalar_lea.hbm %s1813_s17, 256  ;;  %s1403_s9 = scalar_lea.hbm %s1860_s5, 512 }
 0x482   : > { %p1400_p8 = scmp.ne.s32.totalorder %s1813_s17, %s1399_s6  ;;  %p1404_p1 = scmp.lt.u32.totalorder %s1813_s17, %s1860_s5 }
 0x483   : > { %p1405_p0 = scmp.lt.u32.totalorder %s1403_s9, %s1399_s6  ;;  %p1407_p6 = scmp.lt.u32.totalorder %s1399_s6, %s1813_s17 }
 0x484   : > { %p1401_p11 = pnand %p1400_p8, %p1871_p9 }
 0x485   : > { %p1406_p5 = por %p1405_p0, %p1404_p1 }
 0x486   : > { %p1402_p13 = pneg %p1401_p11 }
 0x487   : > { %p1408_p10 = por %p1407_p6, %p1406_p5 }
 0x489   : > { %p1409_p12 = pnand %p1408_p10, %p1402_p13 }
 0x48b   : > { %1412 = shalt.err (!%p1409_p12)
}
 0x48c   : > { %1100 = dma.vmem_to_hbm [thread:$0]  (%p1871_p9), %s1815_s14, 256, %s1813_s17, %s963_s23  }
 0x48d PF: > { %p1112_p2 = scmp.ge.s32.totalorder %s1451_s21, 2  ;;  %s989_s12 = sand.u32 1, %s1439_s18  }
 0x48e   : > { %p1872_p3 = scmp.ne.s32.totalorder %s1865_s29, 0  ;;  %s990_s13 = scalar_lea.sflag [#allocation6], %s989_s12 }
 0x490   : > { %p1107_p4 = pnand %p1112_p2, %p1872_p3 }
 0x492   : > { %1434 = dma.done.wait (!%p1107_p4), %s990_s13, 256  }
 0x493   : > { %1436 = vsyncadd (!%p1107_p4), %s990_s13, 4294967040  ;;  %p16_p7 = scmp.ge.s32.totalorder %s1524_s24, 4   ;;  %s1873_s18 = smov %s1443_s19 }
 0x494   : > { %s1874_s19 = smov %s1447_s20  ;;  %s1875_s20 = smov %s1535_s27 }
 0x495   : > { %s1876_s21 = smov %s1524_s24  ;;  %18 = sbr.rel (!%p16_p7) target bundleno = 4 (0x4), region = 80 }
 0x49c   :  { %995 = vsyncpa [#allocation5], 1 }
 0x49d   :  { %997 = vsyncpa [#allocation5 + $0x1], 1 }
 0x49e   :  { %998 = vsyncpa [#allocation6], 1 }
 0x49f   :  { %1000 = vsyncpa [#allocation6 + $0x1], 1 }

</bundles_post_ra>
